<compile_context>
chip_gen: v7x
topology: tpu7x:2x2x1
jax: 0.10.0
libtpu: 0.0.40
codegen_flags: <defaults>
</compile_context>

<pallas_src>
import jax
import jax.numpy as jnp
from jax.experimental import pallas as pl
from jax.experimental.pallas import tpu as pltpu


def fusion_matmul_kernel(x_ref, w_ref, b_ref, o_ref):
    # One MXU push (f32 accumulate) + VPU bias add. Scales are already folded
    # into w_ref, so there is no elementwise pre-multiply on the hot path.
    acc = jnp.dot(x_ref[...], w_ref[...], preferred_element_type=jnp.float32)
    o_ref[...] = (acc + b_ref[...]).astype(o_ref.dtype)


def prescale_fusion_weight(video_weight, sensor_weights, fusion_w):
    """Fold the static per-modality scales into the fusion weight.

    video_weight: (1, Dv); sensor_weights: 4 x (1, Ds);
    fusion_w: (Dv + 4*Ds, Df)  (input-major, i.e. transpose of torch layout).
    Returns W' = diag(concat(scales)) @ fusion_w, shape (Dv + 4*Ds, Df).
    Call this ONCE (parameters are static), not per forward pass.
    """
    scale = jnp.concatenate([video_weight.reshape(-1)]
                            + [sw.reshape(-1) for sw in sensor_weights])
    return scale[:, None] * fusion_w


def fusion_model_forward(video, sensors, w_scaled, fusion_b, *, tm_cap=512):
    """Forward pass equivalent to FusionModel.forward.

    video: (B, Dv); sensors: list of 4 (B, Ds);
    w_scaled: (Dv + 4*Ds, Df) pre-scaled weight from prescale_fusion_weight;
    fusion_b: (Df,).  Returns (B, Df).
    """
    # Pure layout glue: one packed activation slab -> one lane-dense operand,
    # one DMA, instead of 5 separate sub-128-lane tiles.
    x = jnp.concatenate([video, *sensors], axis=1)          # (B, K)
    B, K = x.shape
    Df = w_scaled.shape[1]
    bias2d = fusion_b.reshape(1, Df)

    # Batch tiling: whole batch in one block when small, 512-row tiles when
    # large (kept well under the v7x 32 MiB scoped-VMEM default even when
    # double-buffered).  Weight / bias blocks are grid-invariant -> resident.
    tm = B if B <= tm_cap else tm_cap
    grid = (pl.cdiv(B, tm),)

    out = pl.pallas_call(
        fusion_matmul_kernel,
        out_shape=jax.ShapeDtypeStruct((B, Df), video.dtype),
        grid_spec=pltpu.PrefetchScalarGridSpec(
            num_scalar_prefetch=0,
            grid=grid,
            in_specs=[
                pl.BlockSpec((tm, K), lambda i: (i, 0)),     # activations
                pl.BlockSpec((K, Df), lambda i: (0, 0)),     # resident weight
                pl.BlockSpec((1, Df), lambda i: (0, 0)),     # resident bias
            ],
            out_specs=pl.BlockSpec((tm, Df), lambda i: (i, 0)),
        ),
        compiler_params=pltpu.CompilerParams(
            # Batch axis is independent -> shards across the 2 TCs on v7x.
            dimension_semantics=("parallel",),
        ),
    )(x, w_scaled, bias2d)
    return out


if __name__ == "__main__":
    # Small shapes consistent with the module.  fused_dim chosen as 128 so the
    # output last dim is lane-dense (unmasked vector stores).
    B, video_dim, sensor_dim, fused_dim = 8, 32, 16, 128

    key = jax.random.PRNGKey(0)
    keys = jax.random.split(key, 12)

    video = jax.random.normal(keys[0], (B, video_dim), dtype=jnp.float32)
    sensors = [jax.random.normal(keys[1 + i], (B, sensor_dim), dtype=jnp.float32)
               for i in range(4)]

    # Parameters (shapes from __init__): randn modality weights, uniform linear init.
    video_weight = jax.random.normal(keys[5], (1, video_dim), dtype=jnp.float32)
    sensor_weights = [jax.random.normal(keys[6 + i], (1, sensor_dim), dtype=jnp.float32)
                      for i in range(4)]
    in_dim = video_dim + 4 * sensor_dim
    bound = 1.0 / (in_dim ** 0.5)
    # Stored directly as (in_dim, fused_dim) == transpose of torch's (out, in) layout.
    fusion_w = jax.random.uniform(keys[10], (in_dim, fused_dim),
                                  minval=-bound, maxval=bound, dtype=jnp.float32)
    fusion_b = jax.random.uniform(keys[11], (fused_dim,),
                                  minval=-bound, maxval=bound, dtype=jnp.float32)

    # Static one-time fold of modality scales into the fusion weight.
    w_scaled = prescale_fusion_weight(video_weight, sensor_weights, fusion_w)
    w_scaled = jax.block_until_ready(w_scaled)

    out = fusion_model_forward(video, sensors, w_scaled, fusion_b)
    out = jax.block_until_ready(out)

    # Pure-JAX reference mirroring the PyTorch forward exactly
    # (scale each modality, concat, then Linear).
    fused = jnp.concatenate([video * video_weight]
                            + [sensors[i] * sensor_weights[i] for i in range(4)],
                            axis=1)
    ref = fused @ fusion_w + fusion_b

    assert out.shape == (B, fused_dim)
    assert jnp.allclose(out, ref, atol=1e-4, rtol=1e-4)

    print("KERNEL_OK")
</pallas_src>

<mosaic_0001>
module attributes {stable_mosaic.version = 11 : i64} {
  func.func @fusion_matmul_kernel(%arg0: i32, %arg1: memref<8x96xf32, #tpu.memory_space<vmem>>, %arg2: memref<96x128xf32, #tpu.memory_space<vmem>>, %arg3: memref<1x128xf32, #tpu.memory_space<vmem>>, %arg4: memref<8x128xf32, #tpu.memory_space<vmem>>) attributes {dimension_semantics = [#tpu.dimension_semantics<parallel>], iteration_bounds = array<i64: 1>, scalar_prefetch = 0 : i64, scratch_operands = 0 : i64, tpu.core_type = #tpu.core_type<tc>, window_params = [{transform_indices = @transform_0, window_bounds = array<i64: 8, 96>}, {pipeline_mode = #tpu.pipeline_mode<synchronous>, transform_indices = @transform_1, window_bounds = array<i64: 96, 128>}, {pipeline_mode = #tpu.pipeline_mode<synchronous>, transform_indices = @transform_2, window_bounds = array<i64: 1, 128>}, {transform_indices = @transform_3, window_bounds = array<i64: 8, 128>}]} {
    %c0 = arith.constant 0 : index
    %c0_0 = arith.constant 0 : index
    %0 = vector.load %arg1[%c0, %c0_0] : memref<8x96xf32, #tpu.memory_space<vmem>>, vector<8x96xf32>
    %c0_1 = arith.constant 0 : index
    %c0_2 = arith.constant 0 : index
    %1 = vector.load %arg2[%c0_1, %c0_2] : memref<96x128xf32, #tpu.memory_space<vmem>>, vector<96x128xf32>
    %cst = arith.constant dense<0.000000e+00> : vector<8x128xf32>
    %2 = tpu.matmul %0, %1, %cst {dimension_numbers = #tpu.dot_dimension_numbers<[1], [0], [0], [1], [0, 0, 1, 1], [], []>} : vector<8x96xf32>, vector<96x128xf32>, vector<8x128xf32> -> vector<8x128xf32>
    %c0_3 = arith.constant 0 : index
    %c0_4 = arith.constant 0 : index
    %3 = vector.load %arg3[%c0_3, %c0_4] : memref<1x128xf32, #tpu.memory_space<vmem>>, vector<1x128xf32>
    %4 = vector.broadcast %3 : vector<1x128xf32> to vector<8x128xf32>
    %5 = arith.addf %2, %4 : vector<8x128xf32>
    %c0_5 = arith.constant 0 : index
    %c0_6 = arith.constant 0 : index
    %6 = vector.load %arg4[%c0_5, %c0_6] : memref<8x128xf32, #tpu.memory_space<vmem>>, vector<8x128xf32>
    tpu.vector_store %arg4[%c0_5, %c0_6], %5 {strides = array<i32>} : memref<8x128xf32, #tpu.memory_space<vmem>>, vector<8x128xf32>,
    return
  }
  func.func @transform_0(%arg0: i32) -> (i32, i32) {
    %c0_i32 = arith.constant 0 : i32
    %c0_i32_0 = arith.constant 0 : i32
    return %arg0, %c0_i32 : i32, i32
  }
  func.func @transform_1(%arg0: i32) -> (i32, i32) {
    %c0_i32 = arith.constant 0 : i32
    %c0_i32_0 = arith.constant 0 : i32
    %c0_i32_1 = arith.constant 0 : i32
    return %c0_i32, %c0_i32_0 : i32, i32
  }
  func.func @transform_2(%arg0: i32) -> (i32, i32) {
    %c0_i32 = arith.constant 0 : i32
    %c0_i32_0 = arith.constant 0 : i32
    %c0_i32_1 = arith.constant 0 : i32
    return %c0_i32, %c0_i32_0 : i32, i32
  }
  func.func @transform_3(%arg0: i32) -> (i32, i32) {
    %c0_i32 = arith.constant 0 : i32
    %c0_i32_0 = arith.constant 0 : i32
    return %arg0, %c0_i32 : i32, i32
  }
}

</mosaic_0001>

<bundles_post_ra>
// kernel: tpu_custom_call.1
= control target key start
LH: loop header
LB: loop body
LE: loop exit
PB: predicated region body
PF: predicated region fallthrough
CT: control target
= control target key end

     0   :  { %8 = vsyncpa [#allocation3], 0  ;;  %s366_s0 = inlined_call_operand.hbm [shape: f32[8,96], index: 0, kind: input, shape index: {}]   ;;  %s367_s1 = inlined_call_operand.hbm [shape: f32[96,128], index: 1, kind: input, shape index: {}]   ;;  %s368_s2 = inlined_call_operand.vmem [shape: f32[1,128], index: 2, kind: input, shape index: {}]   ;;  %s369_s3 = inlined_call_operand.hbm [shape: f32[8,128], index: 3, kind: output, shape index: {}]  }
   0x1   :  { %9 = vsyncpa [#allocation6], 0 }
   0x2   :  { %10 = vsyncpa [#allocation4], 0  ;;  %s292_s12 = smov [#allocation2]   ;;  %s293_s14 = smov [#allocation5]  }
   0x3   :  { %s17_s13 = sshll.u32 %s292_s12, 4  ;;  %s26_s15 = sshll.u32 %s293_s14, 4  ;;  %s18_s13 = int_to_ptr.vmem [resolvable:$true] %s17_s13  ;;  %s320_s15 = int_to_ptr.vmem [resolvable:$true] %s26_s15 }
   0x4   :  { %s220_s18 = scalar_lea.hbm %s366_s0, 128 }
   0x5   :  { %p221_p0 = scmp.ne.s32.totalorder %s366_s0, %s220_s18  ;;  %p224_p1 = scmp.lt.u32.totalorder %s220_s18, %s366_s0 }
   0x7   :  { %p226_p2 = pnand %p224_p1, %p221_p0 }
   0x9   :  { %229 = shalt.err (!%p226_p2)
}
   0xa   :  { %s230_s23 = scalar_lea.vmem %s18_s13, 128  ;;  %p235_p4 = scmp.lt.s32.totalorder %s18_s13, %s18_s13 }
   0xb   :  { %p231_p3 = scmp.ne.s32.totalorder %s18_s13, %s230_s23  ;;  %p236_p5 = scmp.lt.s32.totalorder %s230_s23, %s230_s23 }
   0xd   :  { %p237_p6 = por %p236_p5, %p235_p4 }
   0xf   :  { %p238_p7 = pnand %p237_p6, %p231_p3 }
  0x11   :  { %241 = shalt.err (!%p238_p7)
}
  0x12   :  { %20 = dma.hbm_to_vmem [thread:$0]  %s366_s0, 128, %s18_s13, [#allocation3]  }
  0x13   :  { %s242_s28 = scalar_lea.hbm %s367_s1, 1536 }
  0x14   :  { %p243_p8 = scmp.ne.s32.totalorder %s367_s1, %s242_s28  ;;  %p246_p9 = scmp.lt.u32.totalorder %s242_s28, %s367_s1 }
  0x16   :  { %p248_p10 = pnand %p246_p9, %p243_p8 }
  0x18   :  { %251 = shalt.err (!%p248_p10)
}
  0x19   :  { %s252_s6 = scalar_lea.vmem %s320_s15, 1536  ;;  %p257_p12 = scmp.lt.s32.totalorder %s320_s15, %s320_s15 }
  0x1a   :  { %p253_p11 = scmp.ne.s32.totalorder %s320_s15, %s252_s6  ;;  %p258_p13 = scmp.lt.s32.totalorder %s252_s6, %s252_s6 }
  0x1c   :  { %p259_p0 = por %p258_p13, %p257_p12 }
  0x1e   :  { %p260_p1 = pnand %p259_p0, %p253_p11 }
  0x20   :  { %263 = shalt.err (!%p260_p1)
}
  0x21   :  { %s294_s0 = smov 128   ;;  %s295_s7 = smov 8  }
  0x22   :  { %32 = dma.hbm_to_vmem [thread:$0]  %s367_s1, 1536, %s320_s15, [#allocation6], %s294_s0, %s294_s0, %s295_s7  }
  0x23   :  { %286 = dma.done.wait [#allocation3], 128  }
  0x24   :  { %287 = vsyncadd [#allocation3], 4294967168 }
  0x25   :  { %288 = dma.done.wait [#allocation6], 1536  }
  0x26   :  { %289 = vsyncadd [#allocation6], 4294965760  ;;  %v296_v0 = vmov 0.0|0.0   ;;  %vm297_vm0 = vmmov 0   ;;  %v298_v1 = vmov 0.0   ;;  %v42_v2 = vld [vmem:[#allocation5] sm:$0xff] }
  0x27   :  { %194 = vmatprep.subr.bf16.mxu0 %v296_v0  ;;  %191 = vmatprep.mubr.msk.f32.mxu0 %vm297_vm0, %v298_v1  ;;  %v43_v3 = vld [vmem:[#allocation5 + $0x8] sm:$0xff]  ;;  %v44_v4 = vld [vmem:[#allocation5 + $0x10] sm:$0xff]  ;;  %v45_v6 = vld [vmem:[#allocation5 + $0x18] sm:$0xff]  ;;  %vm61_vm1 = vcmask 785408   ;;  %s299_s11 = smov [#allocation7]  }
  0x28   :  { %v195_v5 = vpack.c.bf16 %v43_v3, %v42_v2  ;;  %v198_v7 = vpack.c.bf16 %v45_v6, %v44_v4  ;;  %v46_v8 = vld [vmem:[#allocation5 + $0x20] sm:$0xff]  ;;  %v47_v9 = vld [vmem:[#allocation5 + $0x28] sm:$0xff]  ;;  %v48_v11 = vld [vmem:[#allocation5 + $0x30] sm:$0xff]  ;;  %s142_s12 = sshll.u32 %s299_s11, 4  ;;  %s143_s12 = int_to_ptr.vmem [resolvable:$true] %s142_s12 }
  0x29   :  { %v201_v10 = vpack.c.bf16 %v47_v9, %v46_v8  ;;  %v49_v12 = vld [vmem:[#allocation5 + $0x38] sm:$0xff]  ;;  %v50_v14 = vld [vmem:[#allocation5 + $0x40] sm:$0xff]  ;;  %v51_v15 = vld [vmem:[#allocation5 + $0x48] sm:$0xff]  ;;  %s264_s13 = scalar_lea.vmem %s143_s12, 128  ;;  %p269_p3 = scmp.lt.s32.totalorder %s143_s12, %s143_s12 }
  0x2a   :  { %196 = vmatpush3.bf16.msra.mxu0 %v195_v5  ;;  %v204_v13 = vpack.c.bf16 %v49_v12, %v48_v11  ;;  %v207_v16 = vpack.c.bf16 %v51_v15, %v50_v14  ;;  %v52_v17 = vld [vmem:[#allocation5 + $0x50] sm:$0xff]  ;;  %v53_v18 = vld [vmem:[#allocation5 + $0x58] sm:$0xff]  ;;  %p265_p2 = scmp.ne.s32.totalorder %s143_s12, %s264_s13  ;;  %p270_p4 = scmp.lt.s32.totalorder %s264_s13, %s264_s13 }
  0x2b   :  { %197 = vmatprep.subr.bf16.mxu0 %v296_v0  ;;  %v210_v19 = vpack.c.bf16 %v53_v18, %v52_v17  ;;  %v41_v20 = vld [vmem:[#allocation2] sm:$0xff] }
  0x2c   :  { %v152_v21 = vld [vmem:[%s368_s2] ss:$0 sm:$0xff]  ;;  %p271_p5 = por %p270_p4, %p269_p3 }
  0x2e   :  { %199 = vmatpush3.bf16.msra.mxu0 %v198_v7  ;;  %p272_p6 = pnand %p271_p5, %p265_p2 }
  0x2f   :  { %200 = vmatprep.subr.bf16.mxu0 %v296_v0 }
  0x32   :  { %202 = vmatpush3.bf16.msra.mxu0 %v201_v10 }
  0x33   :  { %203 = vmatprep.subr.bf16.mxu0 %v296_v0 }
  0x36   :  { %205 = vmatpush3.bf16.msra.mxu0 %v204_v13 }
  0x37   :  { %206 = vmatprep.subr.bf16.mxu0 %v296_v0 }
  0x3a   :  { %208 = vmatpush3.bf16.msra.mxu0 %v207_v16 }
  0x3b   :  { %209 = vmatprep.subr.bf16.mxu0 %v296_v0 }
  0x3e   :  { %211 = vmatpush3.bf16.msra.mxu0 %v210_v19 }
  0x41   :  { %192 = vmatmul.mubr.msk.f32.vlgmr.msra.gmra.mrb[0].mxu0 %vm61_vm1, %v41_v20 }
 0x114   :  { %v131_v22 = vpop.f32.mrb[0].mxu0 }
 0x115   :  { %v132_v23 = vadd.f32 %v152_v21, %v131_v22  ;;  %v193_v24 = vpop.f32.mrb[1].mxu0 }
 0x117   :  { %135 = vst [vmem:[#allocation7] sm:$0xff] %v132_v23 }
 0x118   :  { %275 = shalt.err (!%p272_p6)
}
 0x119   :  { %s276_s16 = scalar_lea.hbm %s369_s3, 128 }
 0x11a   :  { %p277_p7 = scmp.ne.s32.totalorder %s369_s3, %s276_s16  ;;  %p280_p8 = scmp.lt.u32.totalorder %s276_s16, %s369_s3 }
 0x11c   :  { %p282_p9 = pnand %p280_p8, %p277_p7 }
 0x11e   :  { %285 = shalt.err (!%p282_p9)
}
 0x11f   :  { %145 = dma.vmem_to_hbm [thread:$0]  %s143_s12, 128, %s369_s3, [#allocation4]  }
 0x120   :  { %290 = dma.done.wait [#allocation4], 128  }
 0x121   :  { %291 = vsyncadd [#allocation4], 4294967168 }
 0x122   :  { %149 = vsyncpa [#allocation3], 1 }
 0x123   :  { %150 = vsyncpa [#allocation6], 1 }
 0x124   :  { %151 = vsyncpa [#allocation4], 1 }

</bundles_post_ra>
